<compile_context>
chip_gen: v7x
topology: tpu7x:2x2x1
jax: 0.10.0
libtpu: 0.0.40
codegen_flags: <defaults>
</compile_context>

<pallas_src>
import jax
import jax.numpy as jnp
from jax.experimental import pallas as pl
from jax.experimental.pallas import tpu as pltpu

H = 128  # padded (lane-dense) hidden width for all layers


def _round_up(n, m):
    return ((n + m - 1) // m) * m


def _actor_kernel(x_ref, w1_ref, wst_ref, b_ref, o_ref):
    # x arrives as f32 (no wrapper-side cast); cast to bf16 for the MXU.
    x = x_ref[...].astype(jnp.bfloat16)
    # Layer 1: [TB, F] @ [F, H]  (bf16 inputs, f32 accumulate)
    h = jnp.dot(x, w1_ref[...], preferred_element_type=jnp.float32)
    h = jnp.maximum(h + b_ref[0:1, :], 0.0)                       # ReLU (f32)
    # Layer 2
    h = jnp.dot(h.astype(jnp.bfloat16), wst_ref[0],
                preferred_element_type=jnp.float32)
    h = jnp.maximum(h + b_ref[1:2, :], 0.0)                       # ReLU (f32)
    # Layer 3
    h = jnp.dot(h.astype(jnp.bfloat16), wst_ref[1],
                preferred_element_type=jnp.float32)
    h = jnp.maximum(h + b_ref[2:3, :], 0.0)                       # ReLU (f32)
    # Layer 4 + Tanh (f32 math, bf16 store)
    h = jnp.dot(h.astype(jnp.bfloat16), wst_ref[2],
                preferred_element_type=jnp.float32)
    o_ref[...] = jnp.tanh(h + b_ref[3:4, :]).astype(o_ref.dtype)


def pack_params(params, features, actions):
    """Pad hidden dims to 128 lanes and pack 8 tensors into 3 operands."""
    w1 = jnp.zeros((features, H), jnp.float32).at[:, :64].set(params["w1"])
    w2 = jnp.zeros((H, H), jnp.float32).at[:64, :128].set(params["w2"])
    w3 = jnp.zeros((H, H), jnp.float32).at[:128, :64].set(params["w3"])
    w4 = jnp.zeros((H, H), jnp.float32).at[:64, :actions].set(params["w4"])
    b = jnp.zeros((4, H), jnp.float32)
    b = b.at[0, :64].set(params["b1"][0])
    b = b.at[1, :128].set(params["b2"][0])
    b = b.at[2, :64].set(params["b3"][0])
    b = b.at[3, :actions].set(params["b4"][0])
    return {
        "w1": w1.astype(jnp.bfloat16),
        "wstack": jnp.stack([w2, w3, w4], axis=0).astype(jnp.bfloat16),
        "b": b,                       # biases stay f32
        "features": features,
        "actions": actions,
    }


def ddpg_actor_forward(x, packed, *, block_b=512):
    """x: [B, features] float32; packed: output of pack_params.

    Returns a [B, actions] bfloat16 array (tanh output, well-conditioned
    for bf16).
    """
    B, F = x.shape
    actions = packed["actions"]

    # Batch tile: multiple of 16 sublanes (bf16 output packing), capped at
    # block_b, and chosen so the grid has >= 2 blocks whenever B allows it
    # (feeds both TensorCores on v7x via the "parallel" semantic).
    TB = max(16, min(block_b, _round_up(pl.cdiv(B, 2), 16)))
    num_blocks = pl.cdiv(B, TB)

    out = pl.pallas_call(
        _actor_kernel,
        out_shape=jax.ShapeDtypeStruct((B, H), jnp.bfloat16),
        grid=(num_blocks,),
        in_specs=[
            pl.BlockSpec((TB, F), lambda i: (i, 0)),        # x: tiled over batch
            pl.BlockSpec((F, H), lambda i: (0, 0)),         # w1: resident
            pl.BlockSpec((3, H, H), lambda i: (0, 0, 0)),   # w2/w3/w4: resident
            pl.BlockSpec((4, H), lambda i: (0, 0)),         # biases: resident
        ],
        out_specs=pl.BlockSpec((TB, H), lambda i: (i, 0)),  # lane-dense bf16 slab
        compiler_params=pltpu.CompilerParams(
            dimension_semantics=("parallel",),              # v7x: 2 TCs
            vmem_limit_bytes=32 * 1024 * 1024,
        ),
    )(x, packed["w1"], packed["wstack"], packed["b"])

    # Lane-only slice on the bf16 output (batch is already exact: no pad).
    return out[:, :actions]


def init_params(key, features, actions):
    """Shapes mirror the PyTorch module (weights stored as [in, out]).

    fc1..fc3: PyTorch default Linear init (+-1/sqrt(fan_in));
    fc4: uniform(-BOUND_INIT, BOUND_INIT).
    """
    BOUND_INIT = 0.005
    dims = [(features, 64), (64, 128), (128, 64), (64, actions)]
    params = {}
    keys = jax.random.split(key, 8)
    for i, (fan_in, fan_out) in enumerate(dims, start=1):
        bound = 1.0 / jnp.sqrt(float(fan_in)) if i < 4 else BOUND_INIT
        params[f"w{i}"] = jax.random.uniform(
            keys[2 * (i - 1)], (fan_in, fan_out),
            minval=-bound, maxval=bound, dtype=jnp.float32)
        params[f"b{i}"] = jax.random.uniform(
            keys[2 * (i - 1) + 1], (1, fan_out),
            minval=-bound, maxval=bound, dtype=jnp.float32)
    return params


def reference_forward_bf16(x, p):
    """Pure-JAX reference mimicking the kernel's bf16-matmul / f32-accumulate."""
    def dot(a, w):
        return jnp.dot(a.astype(jnp.bfloat16), w.astype(jnp.bfloat16),
                       preferred_element_type=jnp.float32)
    h = jnp.maximum(dot(x, p["w1"]) + p["b1"], 0.0)
    h = jnp.maximum(dot(h, p["w2"]) + p["b2"], 0.0)
    h = jnp.maximum(dot(h, p["w3"]) + p["b3"], 0.0)
    return jnp.tanh(dot(h, p["w4"]) + p["b4"])


def reference_forward_f32(x, p):
    h = jnp.maximum(x @ p["w1"] + p["b1"], 0.0)
    h = jnp.maximum(h @ p["w2"] + p["b2"], 0.0)
    h = jnp.maximum(h @ p["w3"] + p["b3"], 0.0)
    return jnp.tanh(h @ p["w4"] + p["b4"])


if __name__ == "__main__":
    key = jax.random.PRNGKey(0)
    k_x, k_p = jax.random.split(key)

    # Small shapes; batch chosen so TB=112 -> 2 grid blocks (megacore path on
    # v7x) with a ragged last block (exercises the no-pad path).
    batch = 200
    features = 16
    actions = 4

    x = jax.random.normal(k_x, (batch, features), dtype=jnp.float32)
    params = init_params(k_p, features, actions)
    packed = pack_params(params, features, actions)

    out = jax.block_until_ready(ddpg_actor_forward(x, packed))
    assert out.shape == (batch, actions)
    assert out.dtype == jnp.bfloat16

    out_f32 = out.astype(jnp.float32)
    ref_bf16 = reference_forward_bf16(x, params)
    ref_f32 = reference_forward_f32(x, params)
    # Output is stored as bf16 (abs rounding error ~4e-3 near |y|~1).
    assert jnp.allclose(out_f32, ref_bf16, atol=1e-2, rtol=1e-2), \
        "mismatch vs bf16 reference"
    assert jnp.allclose(out_f32, ref_f32, atol=3e-2, rtol=3e-2), \
        "mismatch vs f32 reference"

    # TODO(synk): train_model / soft_update_parameters / optimizer are host-side
    # training utilities, not part of the forward pass, and are not kernelized.

    print("KERNEL_OK")
</pallas_src>

<mosaic_0001>
module attributes {stable_mosaic.version = 11 : i64} {
  func.func @_actor_kernel(%arg0: i32, %arg1: memref<112x16xf32, #tpu.memory_space<vmem>>, %arg2: memref<16x128xbf16, #tpu.memory_space<vmem>>, %arg3: memref<3x128x128xbf16, #tpu.memory_space<vmem>>, %arg4: memref<4x128xf32, #tpu.memory_space<vmem>>, %arg5: memref<112x128xbf16, #tpu.memory_space<vmem>>) attributes {dimension_semantics = [#tpu.dimension_semantics<parallel>], iteration_bounds = array<i64: 2>, scalar_prefetch = 0 : i64, scratch_operands = 0 : i64, tpu.core_type = #tpu.core_type<tc>, window_params = [{transform_indices = @transform_0, window_bounds = array<i64: 112, 16>}, {pipeline_mode = #tpu.pipeline_mode<synchronous>, transform_indices = @transform_1, window_bounds = array<i64: 16, 128>}, {pipeline_mode = #tpu.pipeline_mode<synchronous>, transform_indices = @transform_2, window_bounds = array<i64: 3, 128, 128>}, {pipeline_mode = #tpu.pipeline_mode<synchronous>, transform_indices = @transform_3, window_bounds = array<i64: 4, 128>}, {transform_indices = @transform_4, window_bounds = array<i64: 112, 128>}]} {
    %c0 = arith.constant 0 : index
    %c0_0 = arith.constant 0 : index
    %0 = vector.load %arg1[%c0, %c0_0] : memref<112x16xf32, #tpu.memory_space<vmem>>, vector<112x16xf32>
    %1 = arith.truncf %0 : vector<112x16xf32> to vector<112x16xbf16>
    %c0_1 = arith.constant 0 : index
    %c0_2 = arith.constant 0 : index
    %2 = vector.load %arg2[%c0_1, %c0_2] : memref<16x128xbf16, #tpu.memory_space<vmem>>, vector<16x128xbf16>
    %cst = arith.constant dense<0.000000e+00> : vector<112x128xf32>
    %3 = tpu.matmul %1, %2, %cst {dimension_numbers = #tpu.dot_dimension_numbers<[1], [0], [0], [1], [0, 0, 1, 1], [], []>} : vector<112x16xbf16>, vector<16x128xbf16>, vector<112x128xf32> -> vector<112x128xf32>
    %c0_3 = arith.constant 0 : index
    %c0_4 = arith.constant 0 : index
    %4 = vector.load %arg4[%c0_3, %c0_4] : memref<4x128xf32, #tpu.memory_space<vmem>>, vector<1x128xf32>
    %5 = vector.broadcast %4 : vector<1x128xf32> to vector<112x128xf32>
    %6 = arith.addf %3, %5 : vector<112x128xf32>
    %cst_5 = arith.constant 0.000000e+00 : f32
    %7 = vector.broadcast %cst_5 : f32 to vector<112x128xf32>
    %8 = arith.maximumf %6, %7 : vector<112x128xf32>
    %9 = arith.truncf %8 : vector<112x128xf32> to vector<112x128xbf16>
    %c0_6 = arith.constant 0 : index
    %c0_7 = arith.constant 0 : index
    %c0_8 = arith.constant 0 : index
    %10 = vector.load %arg3[%c0_6, %c0_7, %c0_8] : memref<3x128x128xbf16, #tpu.memory_space<vmem>>, vector<1x128x128xbf16>
    %11 = vector.shape_cast %10 : vector<1x128x128xbf16> to vector<128x128xbf16>
    %cst_9 = arith.constant dense<0.000000e+00> : vector<112x128xf32>
    %12 = tpu.matmul %9, %11, %cst_9 {dimension_numbers = #tpu.dot_dimension_numbers<[1], [0], [0], [1], [0, 0, 1, 1], [], []>} : vector<112x128xbf16>, vector<128x128xbf16>, vector<112x128xf32> -> vector<112x128xf32>
    %c1 = arith.constant 1 : index
    %c0_10 = arith.constant 0 : index
    %13 = vector.load %arg4[%c1, %c0_10] : memref<4x128xf32, #tpu.memory_space<vmem>>, vector<1x128xf32>
    %14 = vector.broadcast %13 : vector<1x128xf32> to vector<112x128xf32>
    %15 = arith.addf %12, %14 : vector<112x128xf32>
    %cst_11 = arith.constant 0.000000e+00 : f32
    %16 = vector.broadcast %cst_11 : f32 to vector<112x128xf32>
    %17 = arith.maximumf %15, %16 : vector<112x128xf32>
    %18 = arith.truncf %17 : vector<112x128xf32> to vector<112x128xbf16>
    %c1_12 = arith.constant 1 : index
    %c0_13 = arith.constant 0 : index
    %c0_14 = arith.constant 0 : index
    %19 = vector.load %arg3[%c1_12, %c0_13, %c0_14] : memref<3x128x128xbf16, #tpu.memory_space<vmem>>, vector<1x128x128xbf16>
    %20 = vector.shape_cast %19 : vector<1x128x128xbf16> to vector<128x128xbf16>
    %cst_15 = arith.constant dense<0.000000e+00> : vector<112x128xf32>
    %21 = tpu.matmul %18, %20, %cst_15 {dimension_numbers = #tpu.dot_dimension_numbers<[1], [0], [0], [1], [0, 0, 1, 1], [], []>} : vector<112x128xbf16>, vector<128x128xbf16>, vector<112x128xf32> -> vector<112x128xf32>
    %c2 = arith.constant 2 : index
    %c0_16 = arith.constant 0 : index
    %22 = vector.load %arg4[%c2, %c0_16] : memref<4x128xf32, #tpu.memory_space<vmem>>, vector<1x128xf32>
    %23 = vector.broadcast %22 : vector<1x128xf32> to vector<112x128xf32>
    %24 = arith.addf %21, %23 : vector<112x128xf32>
    %cst_17 = arith.constant 0.000000e+00 : f32
    %25 = vector.broadcast %cst_17 : f32 to vector<112x128xf32>
    %26 = arith.maximumf %24, %25 : vector<112x128xf32>
    %27 = arith.truncf %26 : vector<112x128xf32> to vector<112x128xbf16>
    %c2_18 = arith.constant 2 : index
    %c0_19 = arith.constant 0 : index
    %c0_20 = arith.constant 0 : index
    %28 = vector.load %arg3[%c2_18, %c0_19, %c0_20] : memref<3x128x128xbf16, #tpu.memory_space<vmem>>, vector<1x128x128xbf16>
    %29 = vector.shape_cast %28 : vector<1x128x128xbf16> to vector<128x128xbf16>
    %cst_21 = arith.constant dense<0.000000e+00> : vector<112x128xf32>
    %30 = tpu.matmul %27, %29, %cst_21 {dimension_numbers = #tpu.dot_dimension_numbers<[1], [0], [0], [1], [0, 0, 1, 1], [], []>} : vector<112x128xbf16>, vector<128x128xbf16>, vector<112x128xf32> -> vector<112x128xf32>
    %c3 = arith.constant 3 : index
    %c0_22 = arith.constant 0 : index
    %31 = vector.load %arg4[%c3, %c0_22] : memref<4x128xf32, #tpu.memory_space<vmem>>, vector<1x128xf32>
    %32 = vector.broadcast %31 : vector<1x128xf32> to vector<112x128xf32>
    %33 = arith.addf %30, %32 : vector<112x128xf32>
    %34 = math.tanh %33 : vector<112x128xf32>
    %35 = arith.truncf %34 : vector<112x128xf32> to vector<112x128xbf16>
    %c0_23 = arith.constant 0 : index
    %c0_24 = arith.constant 0 : index
    %36 = vector.load %arg5[%c0_23, %c0_24] : memref<112x128xbf16, #tpu.memory_space<vmem>>, vector<112x128xbf16>
    tpu.vector_store %arg5[%c0_23, %c0_24], %35 {strides = array<i32>} : memref<112x128xbf16, #tpu.memory_space<vmem>>, vector<112x128xbf16>,
    return
  }
  func.func @transform_0(%arg0: i32) -> (i32, i32) {
    %c0_i32 = arith.constant 0 : i32
    %c0_i32_0 = arith.constant 0 : i32
    return %arg0, %c0_i32 : i32, i32
  }
  func.func @transform_1(%arg0: i32) -> (i32, i32) {
    %c0_i32 = arith.constant 0 : i32
    %c0_i32_0 = arith.constant 0 : i32
    %c0_i32_1 = arith.constant 0 : i32
    return %c0_i32, %c0_i32_0 : i32, i32
  }
  func.func @transform_2(%arg0: i32) -> (i32, i32, i32) {
    %c0_i32 = arith.constant 0 : i32
    %c0_i32_0 = arith.constant 0 : i32
    %c0_i32_1 = arith.constant 0 : i32
    %c0_i32_2 = arith.constant 0 : i32
    return %c0_i32, %c0_i32_0, %c0_i32_1 : i32, i32, i32
  }
  func.func @transform_3(%arg0: i32) -> (i32, i32) {
    %c0_i32 = arith.constant 0 : i32
    %c0_i32_0 = arith.constant 0 : i32
    %c0_i32_1 = arith.constant 0 : i32
    return %c0_i32, %c0_i32_0 : i32, i32
  }
  func.func @transform_4(%arg0: i32) -> (i32, i32) {
    %c0_i32 = arith.constant 0 : i32
    %c0_i32_0 = arith.constant 0 : i32
    return %arg0, %c0_i32 : i32, i32
  }
}

</mosaic_0001>

<bundles_post_ra>
// kernel: tpu_custom_call.1
= control target key start
LH: loop header
LB: loop body
LE: loop exit
PB: predicated region body
PF: predicated region fallthrough
CT: control target
= control target key end

     0   :  { %9 = vsyncpa [#allocation3], 0  ;;  %s2039_s0 = inlined_call_operand.vmem [shape: f32[200,16], index: 0, kind: input, shape index: {}]   ;;  %s2040_s1 = inlined_call_operand.vmem [shape: bf16[16,128], index: 1, kind: input, shape index: {}]   ;;  %s2041_s2 = inlined_call_operand.vmem [shape: bf16[3,128,128], index: 2, kind: input, shape index: {}]   ;;  %s2042_s3 = inlined_call_operand.vmem [shape: f32[4,128], index: 3, kind: input, shape index: {}]   ;;  %s2043_s4 = inlined_call_operand.hbm [shape: bf16[200,128], index: 4, kind: output, shape index: {}]  }
   0x1   :  { %11 = vsyncpa [#allocation3 + $0x1], 0  ;;  %s1645_s15 = smov 0   ;;  %s1647_s16 = smov 0  }
   0x2   :  { %s1649_s17 = smov 0   ;;  %s1651_s18 = smov 0  }
   0x3 LB: > { %s1666_s19 = sadd.s32 4294967295, %s1613_s18   ;;  %s1074_s20 = sadd.s32 4294967294, %s1613_s18   ;;  %s1613_s18 = sphi %s1651_s18, %s2049_s18   ;;  %s1609_s17 = sphi %s1649_s17, %s2048_s17   ;;  %s1605_s16 = sphi %s1647_s16, %s2047_s16   ;;  %s1601_s15 = sphi %s1645_s15, %s2046_s15  }
   0x4   : > { %s1670_s21 = sadd.s32 1, %s1613_s18   ;;  %s113_s22 = sadd.s32 1, %s1609_s17 }
   0x5   : > { %s110_s23 = ssub.s32 %s1613_s18, %s1670_s21  ;;  %p123_p0 = scmp.ne.s32.totalorder %s1609_s17, %s1605_s16 }
   0x6   : > { %p111_p1 = scmp.eq.s32.totalorder %s110_s23, 0  ;;  %p124_p2 = scmp.eq.s32.totalorder %s1666_s19, 1 }
   0x7   : > { %p129_p3 = scmp.ne.s32.totalorder %s1605_s16, %s1601_s15  ;;  %p130_p4 = scmp.eq.s32.totalorder %s1074_s20, 1 }
   0x8   : > { %s1681_s24 = scalar_select %p111_p1, %s1609_s17, %s113_s22  }
   0x9   : > { %p1683_p5 = por %p124_p2, %p123_p0  ;;  %p1687_p6 = por %p130_p4, %p129_p3 }
   0xa   : > { %p1077_p7 = scmp.ge.s32.totalorder %s1613_s18, 1  ;;  %p174_p8 = scmp.lt.s32.totalorder %s1613_s18, 3 }
   0xc   : > { %p175_p9 = pnand %p1077_p7, %p174_p8 }
   0xd   : > { %v1498_v0 = vld [vmem:[%s2040_s1] sm:$0xff] (!%p175_p9)   ;;  %v1615_v1 = vmov (!%p175_p9), 0.0   ;;  %s1698_s29 = smul.u32 (!%p175_p9), 14, %s1666_s19  ;;  %vm1616_vm0 = vmmov (!%p175_p9), 0   ;;  %v1500_v3 = vld [vmem:[%s2041_s2 + $0x8] sm:$0xff] (!%p175_p9)   ;;  %v1501_v4 = vld [vmem:[%s2041_s2 + $0x10] sm:$0xff] (!%p175_p9)  }
   0xe   : > { %178 = sbr.rel (%p175_p9) target bundleno = 994 (0x3e2), region = 36  ;;  %1277 = vmatprep.subr.bf16.mxu0 (!%p175_p9), %v1615_v1  ;;  %1307 = vmatprep.subr.bf16.mxu1 (!%p175_p9), %v1615_v1  ;;  %v1499_v2 = vld [vmem:[%s2041_s2] sm:$0xff] (!%p175_p9)   ;;  %vm258_vm1 = vcmask (!%p175_p9), 130048   ;;  %v1502_v8 = vld [vmem:[%s2041_s2 + $0x18] sm:$0xff] (!%p175_p9)   ;;  %v1504_v13 = vld [vmem:[%s2041_s2 + $0x28] sm:$0xff] (!%p175_p9)   ;;  %s201_s20 = sand.u32 (!%p175_p9), 1, %s1605_s16  }
   0xf   : > { %1278 = vmatpush3.bf16.msra.mxu0 (!%p175_p9), %v1498_v0  ;;  %1279 = vmatprep.mubr.msk.bf16.mxu0 (!%p175_p9), %vm1616_vm0, %v1615_v1  ;;  %p209_p10 = scmp.lt.s32.totalorder (!%p175_p9), %s1698_s29, 24  ;;  %v1503_v11 = vld [vmem:[%s2041_s2 + $0x20] sm:$0xff] (!%p175_p9)   ;;  %v1505_v29 = vld [vmem:[%s2041_s2 + $0x30] sm:$0xff] (!%p175_p9)   ;;  %v1506_v30 = vld [vmem:[%s2041_s2 + $0x38] sm:$0xff] (!%p175_p9)   ;;  %s1455_s27 = smul.u32 (!%p175_p9), 56, %s201_s20 }
  0x10   : > { %1308 = vmatpush3.bf16.msra.mxu1 (!%p175_p9), %v1499_v2  ;;  %1323 = vmatprep.mubr.msk.bf16.mxu1 (!%p175_p9), %vm1616_vm0, %v1615_v1  ;;  %v1507_v31 = vld [vmem:[%s2041_s2 + $0x40] sm:$0xff] (!%p175_p9)   ;;  %v1508_v32 = vld [vmem:[%s2041_s2 + $0x48] sm:$0xff] (!%p175_p9)   ;;  %v1509_v33 = vld [vmem:[%s2041_s2 + $0x50] sm:$0xff] (!%p175_p9)   ;;  %s1978_s30 = scalar_lea.sflag (!%p175_p9), [#allocation3], %s201_s20 }
  0x11   : > { %1309 = vmatprep.subr.bf16.mxu1 (!%p175_p9), %v1615_v1  ;;  %1351 = vmatprep.subr.bf16.mxu0 (!%p175_p9), %v1615_v1  ;;  %v1510_v34 = vld [vmem:[%s2041_s2 + $0x58] sm:$0xff] (!%p175_p9)   ;;  %v1511_v35 = vld [vmem:[%s2041_s2 + $0x60] sm:$0xff] (!%p175_p9)   ;;  %v1512_v36 = vld [vmem:[%s2041_s2 + $0x68] sm:$0xff] (!%p175_p9)   ;;  %s1958_s28 = scalar_lea.vmem (!%p175_p9), [#allocation2], %s1455_s27 }
  0x12   : > { %v1513_v37 = vld [vmem:[%s2041_s2 + $0x70] sm:$0xff] (!%p175_p9)   ;;  %v1811_v38 = vld [vmem:[%s2042_s3] ss:$0 sm:$0xff] (!%p175_p9) }
  0x14   : > { %1310 = vmatpush3.bf16.msra.mxu1 (!%p175_p9), %v1500_v3 }
  0x15   : > { %s210_s8 = scalar_select %p209_p10, %s1698_s29, 24  ;;  %1311 = vmatprep.subr.bf16.mxu1 %v1615_v1 }
  0x16   : > { %s1001_s5 = ssub.s32 (%p1683_p5), 25, %s1698_s29 }
  0x17   : > { %s1078_s9 = sshll.u32 %s210_s8, 3  ;;  %p1002_p11 = scmp.lt.s32.totalorder (%p1683_p5), %s1001_s5, 14 }
  0x18   : > { %s1721_s14 = scalar_lea.vmem %s2039_s0, %s1078_s9  ;;  %1312 = vmatpush3.bf16.msra.mxu1 %v1501_v4 }
  0x19   : > { %v224_v5 = vld [vmem:[%s1721_s14] sm:$0xff]  ;;  %v225_v6 = vld [vmem:[%s1721_s14 + $0x8] sm:$0xff]  ;;  %1313 = vmatprep.subr.bf16.mxu1 %v1615_v1  ;;  %v226_v9 = vld [vmem:[%s1721_s14 + $0x10] sm:$0xff] }
  0x1a   : > { %v238_v7 = vpack.c.bf16 %v225_v6, %v224_v5  ;;  %v227_v10 = vld [vmem:[%s1721_s14 + $0x18] sm:$0xff]  ;;  %v228_v14 = vld [vmem:[%s1721_s14 + $0x20] sm:$0xff]  ;;  %v229_v15 = vld [vmem:[%s1721_s14 + $0x28] sm:$0xff] }
  0x1b   : > { %v239_v12 = vpack.c.bf16 %v227_v10, %v226_v9  ;;  %v240_v16 = vpack.c.bf16 %v229_v15, %v228_v14  ;;  %v230_v17 = vld [vmem:[%s1721_s14 + $0x30] sm:$0xff]  ;;  %v231_v18 = vld [vmem:[%s1721_s14 + $0x38] sm:$0xff]  ;;  %v232_v20 = vld [vmem:[%s1721_s14 + $0x40] sm:$0xff] }
  0x1c   : > { %1280 = vmatmul.mubr.msk.bf16.vlgmr.msra.gmra.mrb[0].mxu0 %vm258_vm1, %v238_v7  ;;  %1314 = vmatpush3.bf16.msra.mxu1 %v1502_v8  ;;  %v241_v19 = vpack.c.bf16 %v231_v18, %v230_v17  ;;  %v233_v21 = vld [vmem:[%s1721_s14 + $0x48] sm:$0xff]  ;;  %v234_v23 = vld [vmem:[%s1721_s14 + $0x50] sm:$0xff]  ;;  %v235_v24 = vld [vmem:[%s1721_s14 + $0x58] sm:$0xff] }
  0x1d   : > { %1283 = vmatprep.mubr.msk.bf16.mxu0 %vm1616_vm0, %v1615_v1  ;;  %1315 = vmatprep.subr.bf16.mxu1 %v1615_v1  ;;  %v242_v22 = vpack.c.bf16 %v233_v21, %v232_v20  ;;  %v243_v25 = vpack.c.bf16 %v235_v24, %v234_v23  ;;  %v236_v26 = vld [vmem:[%s1721_s14 + $0x60] sm:$0xff]  ;;  %v237_v27 = vld [vmem:[%s1721_s14 + $0x68] sm:$0xff] }
  0x1e   : > { %v244_v28 = vpack.c.bf16 %v237_v27, %v236_v26  ;;  %1352 = vmatpush3.bf16.msra.mxu0 %v1507_v31 }
  0x1f   : > { %1353 = vmatprep.subr.bf16.mxu0 %v1615_v1 }
  0x20   : > { %1316 = vmatpush3.bf16.msra.mxu1 %v1503_v11 }
  0x21   : > { %1317 = vmatprep.subr.bf16.mxu1 %v1615_v1 }
  0x22   : > { %1354 = vmatpush3.bf16.msra.mxu0 %v1508_v32 }
  0x23   : > { %1355 = vmatprep.subr.bf16.mxu0 %v1615_v1 }
  0x24   : > { %1284 = vmatmul.mubr.msk.bf16.gmra.mrb[4].mxu0 %vm258_vm1, %v239_v12  ;;  %1318 = vmatpush3.bf16.msra.mxu1 %v1504_v13 }
  0x25   : > { %1287 = vmatprep.mubr.msk.bf16.mxu0 %vm1616_vm0, %v1615_v1  ;;  %1319 = vmatprep.subr.bf16.mxu1 %v1615_v1 }
  0x26   : > { %1356 = vmatpush3.bf16.msra.mxu0 %v1509_v33 }
  0x27   : > { %1357 = vmatprep.subr.bf16.mxu0 %v1615_v1 }
  0x28   : > { %1320 = vmatpush3.bf16.msra.mxu1 %v1505_v29 }
  0x29   : > { %1321 = vmatprep.subr.bf16.mxu1 %v1615_v1 }
  0x2a   : > { %1358 = vmatpush3.bf16.msra.mxu0 %v1510_v34 }
  0x2b   : > { %1359 = vmatprep.subr.bf16.mxu0 %v1615_v1 }
  0x2c   : > { %1288 = vmatmul.mubr.msk.bf16.gmra.mrb[8].mxu0 %vm258_vm1, %v240_v16  ;;  %1322 = vmatpush3.bf16.msra.mxu1 %v1506_v30 }
  0x2d   : > { %1291 = vmatprep.mubr.msk.bf16.mxu0 %vm1616_vm0, %v1615_v1  ;;  %1439 = vmatprep.subr.bf16.mxu1 %v1615_v1 }
  0x2e   : > { %1360 = vmatpush3.bf16.msra.mxu0 %v1511_v35 }
  0x2f   : > { %1361 = vmatprep.subr.bf16.mxu0 %v1615_v1 }
  0x32   : > { %1362 = vmatpush3.bf16.msra.mxu0 %v1512_v36 }
  0x33   : > { %1363 = vmatprep.subr.bf16.mxu0 %v1615_v1 }
  0x34   : > { %1292 = vmatmul.mubr.msk.bf16.gmra.mrb[12].mxu0 %vm258_vm1, %v241_v19 }
  0x35   : > { %1295 = vmatprep.mubr.msk.bf16.mxu0 %vm1616_vm0, %v1615_v1 }
  0x36   : > { %1364 = vmatpush3.bf16.msra.mxu0 %v1513_v37 }
  0x37   : > { %1365 = vmatprep.subr.bf16.mxu0 %v1615_v1 }
  0x3c   : > { %1296 = vmatmul.mubr.msk.bf16.gmra.mrb[16].mxu0 %vm258_vm1, %v242_v22 }
  0x3d   : > { %1299 = vmatprep.mubr.msk.bf16.mxu0 %vm1616_vm0, %v1615_v1 }
  0x44   : > { %1300 = vmatmul.mubr.msk.bf16.gmra.mrb[20].mxu0 %vm258_vm1, %v243_v25 }
  0x45   : > { %1303 = vmatprep.mubr.msk.bf16.mxu0 %vm1616_vm0, %v1615_v1 }
  0x4c   : > { %1304 = vmatmul.mubr.msk.bf16.gmra.mrb[24].mxu0 %vm258_vm1, %v244_v28 }
  0x4d   : > { %1367 = vmatprep.mubr.msk.bf16.mxu0 %vm1616_vm0, %v1615_v1 }
  0xef   : > { %v314_v39 = vpop.f32.mrb[0].mxu0 }
  0xf0   : > { %v315_v40 = vadd.f32 %v1811_v38, %v314_v39  ;;  %v1281_v41 = vpop.f32.mrb[1].mxu0 }
  0xf1   : > { %v317_v42 = vpop.f32.mrb[2].mxu0  ;;  %v1515_v41 = vld [vmem:[%s2041_s2 + $0x80] sm:$0xff]  }
  0xf2   : > { %v318_v43 = vadd.f32 %v1811_v38, %v317_v42  ;;  %v1282_v44 = vpop.f32.mrb[3].mxu0  ;;  %v369_v45 = vmax.f32 %v315_v40, 0.0  ;;  %v1514_v40 = vld [vmem:[%s2041_s2 + $0x78] sm:$0xff]   ;;  %v1517_v42 = vld [vmem:[%s2041_s2 + $0x90] sm:$0xff]  }
  0xf3   : > { %1366 = vmatpush3.bf16.msra.mxu0 %v1514_v40  ;;  %v1519_v44 = vld [vmem:[%s2041_s2 + $0xa0] sm:$0xff]  }
  0xf4   : > { %v370_v46 = vmax.f32 %v318_v43, 0.0  ;;  %1395 = vmatprep.subr.bf16.mxu0 %v1615_v1  ;;  %v1518_v43 = vld [vmem:[%s2041_s2 + $0x98] sm:$0xff]  }
  0xf6   : > { %v383_v47 = vpack.c.bf16 %v370_v46, %v369_v45  ;;  %v1520_v45 = vld [vmem:[%s2041_s2 + $0xa8] sm:$0xff]   ;;  %v1872_v46 = vld [vmem:[%s2042_s3 + $0x1] ss:$0 sm:$0xff] }
  0xf7   : > { %v322_v48 = vpop.f32.mrb[4].mxu0 }
  0xf8   : > { %v323_v49 = vadd.f32 %v1811_v38, %v322_v48  ;;  %v1285_v50 = vpop.f32.mrb[5].mxu0  ;;  %1324 = vmatmul.mubr.bf16.vlgmr.msra.gmra.mrb[0].mxu1 %v383_v47 }
  0xf9   : > { %v325_v51 = vpop.f32.mrb[6].mxu0  ;;  %1327 = vmatprep.mubr.msk.bf16.mxu1 %vm1616_vm0, %v1615_v1  ;;  %1447 = vmatpush3.bf16.msra.mxu1 %v1515_v41 }
  0xfa   : > { %v326_v52 = vadd.f32 %v1811_v38, %v325_v51  ;;  %v1286_v53 = vpop.f32.mrb[7].mxu0  ;;  %v371_v54 = vmax.f32 %v323_v49, 0.0  ;;  %1440 = vmatprep.subr.bf16.mxu1 %v1615_v1 }
  0xfc   : > { %v372_v55 = vmax.f32 %v326_v52, 0.0 }
  0xfe   : > { %v384_v56 = vpack.c.bf16 %v372_v55, %v371_v54 }
  0xff   : > { %v330_v57 = vpop.f32.mrb[8].mxu0 }
 0x100   : > { %v331_v58 = vadd.f32 %v1811_v38, %v330_v57  ;;  %v1289_v59 = vpop.f32.mrb[9].mxu0  ;;  %1328 = vmatmul.mubr.bf16.gmra.mrb[4].mxu1 %v384_v56 }
 0x101   : > { %v333_v60 = vpop.f32.mrb[10].mxu0  ;;  %1331 = vmatprep.mubr.msk.bf16.mxu1 %vm1616_vm0, %v1615_v1 }
 0x102   : > { %v334_v61 = vadd.f32 %v1811_v38, %v333_v60  ;;  %v1290_v62 = vpop.f32.mrb[11].mxu0  ;;  %v373_v63 = vmax.f32 %v331_v58, 0.0 }
 0x104   : > { %v374_v0 = vmax.f32 %v334_v61, 0.0 }
 0x106   : > { %v385_v2 = vpack.c.bf16 %v374_v0, %v373_v63 }
 0x107   : > { %v338_v3 = vpop.f32.mrb[12].mxu0 }
 0x108   : > { %v339_v4 = vadd.f32 %v1811_v38, %v338_v3  ;;  %v1293_v5 = vpop.f32.mrb[13].mxu0  ;;  %1332 = vmatmul.mubr.bf16.gmra.mrb[8].mxu1 %v385_v2 }
 0x109   : > { %v341_v6 = vpop.f32.mrb[14].mxu0  ;;  %1335 = vmatprep.mubr.msk.bf16.mxu1 %vm1616_vm0, %v1615_v1 }
 0x10a   : > { %v342_v7 = vadd.f32 %v1811_v38, %v341_v6  ;;  %v1294_v8 = vpop.f32.mrb[15].mxu0  ;;  %v375_v9 = vmax.f32 %v339_v4, 0.0 }
 0x10c   : > { %v376_v10 = vmax.f32 %v342_v7, 0.0 }
 0x10e   : > { %v386_v11 = vpack.c.bf16 %v376_v10, %v375_v9 }
 0x10f   : > { %v346_v12 = vpop.f32.mrb[16].mxu0 }
 0x110   : > { %v347_v13 = vadd.f32 %v1811_v38, %v346_v12  ;;  %v1297_v14 = vpop.f32.mrb[17].mxu0  ;;  %1336 = vmatmul.mubr.bf16.gmra.mrb[12].mxu1 %v386_v11 }
 0x111   : > { %v349_v15 = vpop.f32.mrb[18].mxu0  ;;  %1339 = vmatprep.mubr.msk.bf16.mxu1 %vm1616_vm0, %v1615_v1 }
 0x112   : > { %v350_v16 = vadd.f32 %v1811_v38, %v349_v15  ;;  %v1298_v17 = vpop.f32.mrb[19].mxu0  ;;  %v377_v18 = vmax.f32 %v347_v13, 0.0 }
 0x114   : > { %v378_v19 = vmax.f32 %v350_v16, 0.0 }
 0x116   : > { %v387_v20 = vpack.c.bf16 %v378_v19, %v377_v18 }
 0x117   : > { %v354_v21 = vpop.f32.mrb[20].mxu0 }
 0x118   : > { %v355_v22 = vadd.f32 %v1811_v38, %v354_v21  ;;  %v1301_v23 = vpop.f32.mrb[21].mxu0  ;;  %1340 = vmatmul.mubr.bf16.gmra.mrb[16].mxu1 %v387_v20 }
 0x119   : > { %v357_v24 = vpop.f32.mrb[22].mxu0  ;;  %1343 = vmatprep.mubr.msk.bf16.mxu1 %vm1616_vm0, %v1615_v1 }
 0x11a   : > { %v358_v25 = vadd.f32 %v1811_v38, %v357_v24  ;;  %v1302_v26 = vpop.f32.mrb[23].mxu0  ;;  %v379_v27 = vmax.f32 %v355_v22, 0.0 }
 0x11c   : > { %v380_v28 = vmax.f32 %v358_v25, 0.0 }
 0x11e   : > { %v388_v29 = vpack.c.bf16 %v380_v28, %v379_v27 }
 0x11f   : > { %v362_v30 = vpop.f32.mrb[24].mxu0 }
 0x120   : > { %v363_v31 = vadd.f32 %v1811_v38, %v362_v30  ;;  %v1305_v32 = vpop.f32.mrb[25].mxu0  ;;  %1344 = vmatmul.mubr.bf16.gmra.mrb[20].mxu1 %v388_v29 }
 0x121   : > { %v365_v33 = vpop.f32.mrb[26].mxu0  ;;  %1347 = vmatprep.mubr.msk.bf16.mxu1 %vm1616_vm0, %v1615_v1 }
 0x122   : > { %v366_v34 = vadd.f32 %v1811_v38, %v365_v33  ;;  %v1306_v35 = vpop.f32.mrb[27].mxu0  ;;  %v381_v36 = vmax.f32 %v363_v31, 0.0  ;;  %v1516_v38 = vld [vmem:[%s2041_s2 + $0x88] sm:$0xff]  }
 0x123   : > { %1448 = vmatpush3.bf16.msra.mxu1 %v1516_v38 }
 0x124   : > { %v382_v37 = vmax.f32 %v366_v34, 0.0  ;;  %1441 = vmatprep.subr.bf16.mxu1 %v1615_v1 }
 0x126   : > { %v389_v39 = vpack.c.bf16 %v382_v37, %v381_v36 }
 0x127   : > { %1449 = vmatpush3.bf16.msra.mxu1 %v1517_v42 }
 0x128   : > { %1348 = vmatmul.mubr.bf16.gmra.mrb[24].mxu1 %v389_v39  ;;  %1442 = vmatprep.subr.bf16.mxu1 %v1615_v1 }
 0x129   : > { %1415 = vmatprep.mubr.msk.bf16.mxu1 %vm1616_vm0, %v1615_v1 }
 0x12b   : > { %1450 = vmatpush3.bf16.msra.mxu1 %v1518_v43 }
 0x12c   : > { %1443 = vmatprep.subr.bf16.mxu1 %v1615_v1 }
 0x12f   : > { %1451 = vmatpush3.bf16.msra.mxu1 %v1519_v44 }
 0x130   : > { %1444 = vmatprep.subr.bf16.mxu1 %v1615_v1 }
 0x133   : > { %1452 = vmatpush3.bf16.msra.mxu1 %v1520_v45 }
 0x134   : > { %1445 = vmatprep.subr.bf16.mxu1 %v1615_v1 }
 0x1cb   : > { %v493_v47 = vpop.f32.mrb[0].mxu1 }
 0x1cc   : > { %v494_v48 = vadd.f32 %v1872_v46, %v493_v47  ;;  %v1325_v49 = vpop.f32.mrb[1].mxu1 }
 0x1cd   : > { %v496_v50 = vpop.f32.mrb[2].mxu1  ;;  %v1919_v49 = vld [vmem:[%s2042_s3 + $0x2] ss:$0 sm:$0xff] }
 0x1ce   : > { %v497_v51 = vadd.f32 %v1872_v46, %v496_v50  ;;  %v1326_v52 = vpop.f32.mrb[3].mxu1  ;;  %v548_v53 = vmax.f32 %v494_v48, 0.0  ;;  %v1521_v48 = vld [vmem:[%s2041_s2 + $0xb0] sm:$0xff]  }
 0x1cf   : > { %1453 = vmatpush3.bf16.msra.mxu1 %v1521_v48 }
 0x1d0   : > { %v549_v54 = vmax.f32 %v497_v51, 0.0  ;;  %1446 = vmatprep.subr.bf16.mxu1 %v1615_v1 }
 0x1d2   : > { %v562_v55 = vpack.c.bf16 %v549_v54, %v548_v53 }
 0x1d3   : > { %v501_v56 = vpop.f32.mrb[4].mxu1 }
 0x1d4   : > { %v502_v57 = vadd.f32 %v1872_v46, %v501_v56  ;;  %v1329_v58 = vpop.f32.mrb[5].mxu1  ;;  %1368 = vmatmul.mubr.bf16.vlgmr.msra.gmra.mrb[28].mxu0 %v562_v55 }
 0x1d5   : > { %v504_v59 = vpop.f32.mrb[6].mxu1  ;;  %1371 = vmatprep.mubr.msk.bf16.mxu0 %vm1616_vm0, %v1615_v1  ;;  %1396 = vmatpush3.bf16.msra.mxu0 %v1515_v41 }
 0x1d6   : > { %v505_v60 = vadd.f32 %v1872_v46, %v504_v59  ;;  %v1330_v61 = vpop.f32.mrb[7].mxu1  ;;  %1397 = vmatprep.subr.bf16.mxu0 %v1615_v1  ;;  %v550_v62 = vmax.f32 %v502_v57, 0.0 }
 0x1d8   : > { %v551_v63 = vmax.f32 %v505_v60, 0.0 }
 0x1d9   : > { %1398 = vmatpush3.bf16.msra.mxu0 %v1516_v38 }
 0x1da   : > { %v563_v0 = vpack.c.bf16 %v551_v63, %v550_v62  ;;  %1399 = vmatprep.subr.bf16.mxu0 %v1615_v1 }
 0x1db   : > { %v509_v2 = vpop.f32.mrb[8].mxu1 }
 0x1dc   : > { %v510_v3 = vadd.f32 %v1872_v46, %v509_v2  ;;  %v1333_v4 = vpop.f32.mrb[9].mxu1  ;;  %1372 = vmatmul.mubr.bf16.gmra.mrb[32].mxu0 %v563_v0 }
 0x1dd   : > { %v512_v5 = vpop.f32.mrb[10].mxu1  ;;  %1375 = vmatprep.mubr.msk.bf16.mxu0 %vm1616_vm0, %v1615_v1  ;;  %1400 = vmatpush3.bf16.msra.mxu0 %v1517_v42 }
 0x1de   : > { %v513_v6 = vadd.f32 %v1872_v46, %v512_v5  ;;  %v1334_v7 = vpop.f32.mrb[11].mxu1  ;;  %1401 = vmatprep.subr.bf16.mxu0 %v1615_v1  ;;  %v552_v8 = vmax.f32 %v510_v3, 0.0 }
 0x1e0   : > { %v553_v9 = vmax.f32 %v513_v6, 0.0 }
 0x1e1   : > { %1402 = vmatpush3.bf16.msra.mxu0 %v1518_v43 }
 0x1e2   : > { %v564_v10 = vpack.c.bf16 %v553_v9, %v552_v8  ;;  %1403 = vmatprep.subr.bf16.mxu0 %v1615_v1 }
 0x1e3   : > { %v517_v11 = vpop.f32.mrb[12].mxu1 }
 0x1e4   : > { %v518_v12 = vadd.f32 %v1872_v46, %v517_v11  ;;  %v1337_v13 = vpop.f32.mrb[13].mxu1  ;;  %1376 = vmatmul.mubr.bf16.gmra.mrb[36].mxu0 %v564_v10 }
 0x1e5   : > { %v520_v14 = vpop.f32.mrb[14].mxu1  ;;  %1379 = vmatprep.mubr.msk.bf16.mxu0 %vm1616_vm0, %v1615_v1  ;;  %1404 = vmatpush3.bf16.msra.mxu0 %v1519_v44 }
 0x1e6   : > { %v521_v15 = vadd.f32 %v1872_v46, %v520_v14  ;;  %v1338_v16 = vpop.f32.mrb[15].mxu1  ;;  %1405 = vmatprep.subr.bf16.mxu0 %v1615_v1  ;;  %v554_v17 = vmax.f32 %v518_v12, 0.0 }
 0x1e8   : > { %v555_v18 = vmax.f32 %v521_v15, 0.0 }
 0x1e9   : > { %1406 = vmatpush3.bf16.msra.mxu0 %v1520_v45 }
 0x1ea   : > { %v565_v19 = vpack.c.bf16 %v555_v18, %v554_v17  ;;  %1407 = vmatprep.subr.bf16.mxu0 %v1615_v1 }
 0x1eb   : > { %v525_v20 = vpop.f32.mrb[16].mxu1 }
 0x1ec   : > { %v526_v21 = vadd.f32 %v1872_v46, %v525_v20  ;;  %v1341_v22 = vpop.f32.mrb[17].mxu1  ;;  %1380 = vmatmul.mubr.bf16.gmra.mrb[40].mxu0 %v565_v19 }
 0x1ed   : > { %v528_v23 = vpop.f32.mrb[18].mxu1  ;;  %1383 = vmatprep.mubr.msk.bf16.mxu0 %vm1616_vm0, %v1615_v1  ;;  %1408 = vmatpush3.bf16.msra.mxu0 %v1521_v48 }
 0x1ee   : > { %v529_v24 = vadd.f32 %v1872_v46, %v528_v23  ;;  %v1342_v25 = vpop.f32.mrb[19].mxu1  ;;  %v556_v26 = vmax.f32 %v526_v21, 0.0  ;;  %1409 = vmatprep.subr.bf16.mxu0 %v1615_v1 }
 0x1f0   : > { %v557_v27 = vmax.f32 %v529_v24, 0.0 }
 0x1f2   : > { %v566_v28 = vpack.c.bf16 %v557_v27, %v556_v26 }
 0x1f3   : > { %v533_v29 = vpop.f32.mrb[20].mxu1 }
 0x1f4   : > { %v534_v30 = vadd.f32 %v1872_v46, %v533_v29  ;;  %v1345_v31 = vpop.f32.mrb[21].mxu1  ;;  %1384 = vmatmul.mubr.bf16.gmra.mrb[44].mxu0 %v566_v28 }
 0x1f5   : > { %v536_v32 = vpop.f32.mrb[22].mxu1  ;;  %1387 = vmatprep.mubr.msk.bf16.mxu0 %vm1616_vm0, %v1615_v1 }
 0x1f6   : > { %v537_v33 = vadd.f32 %v1872_v46, %v536_v32  ;;  %v1346_v34 = vpop.f32.mrb[23].mxu1  ;;  %v558_v35 = vmax.f32 %v534_v30, 0.0 }
 0x1f8   : > { %v559_v36 = vmax.f32 %v537_v33, 0.0 }
 0x1fa   : > { %v567_v37 = vpack.c.bf16 %v559_v36, %v558_v35 }
 0x1fb   : > { %v541_v39 = vpop.f32.mrb[24].mxu1 }
 0x1fc   : > { %v542_v40 = vadd.f32 %v1872_v46, %v541_v39  ;;  %v1349_v41 = vpop.f32.mrb[25].mxu1  ;;  %1388 = vmatmul.mubr.bf16.gmra.mrb[48].mxu0 %v567_v37 }
 0x1fd   : > { %v544_v38 = vpop.f32.mrb[26].mxu1  ;;  %1391 = vmatprep.mubr.msk.bf16.mxu0 %vm1616_vm0, %v1615_v1 }
 0x1fe   : > { %v545_v42 = vadd.f32 %v1872_v46, %v544_v38  ;;  %v1350_v43 = vpop.f32.mrb[27].mxu1  ;;  %v560_v44 = vmax.f32 %v542_v40, 0.0  ;;  %v1522_v46 = vld [vmem:[%s2041_s2 + $0xb8] sm:$0xff]  }
 0x1ff   : > { %1410 = vmatpush3.bf16.msra.mxu0 %v1522_v46  ;;  %1454 = vmatpush3.bf16.msra.mxu1 %v1522_v46 }
 0x200   : > { %v561_v45 = vmax.f32 %v545_v42, 0.0 }
 0x202   : > { %v568_v47 = vpack.c.bf16 %v561_v45, %v560_v44 }
 0x204   : > { %1392 = vmatmul.mubr.bf16.gmra.mrb[52].mxu0 %v568_v47 }
 0x205   : > { %1411 = vmatprep.mubr.msk.bf16.mxu0 %vm1616_vm0, %v1615_v1 }
 0x2a7   : > { %v673_v50 = vpop.f32.mrb[28].mxu0 }
 0x2a8   : > { %v674_v51 = vadd.f32 %v1919_v49, %v673_v50  ;;  %v1369_v52 = vpop.f32.mrb[29].mxu0 }
 0x2a9   : > { %v676_v53 = vpop.f32.mrb[30].mxu0 }
 0x2aa   : > { %v677_v54 = vadd.f32 %v1919_v49, %v676_v53  ;;  %v1370_v55 = vpop.f32.mrb[31].mxu0  ;;  %v728_v56 = vmax.f32 %v674_v51, 0.0  ;;  %v1949_v51 = vld [vmem:[%s2042_s3 + $0x3] ss:$0 sm:$0xff] }
 0x2ac   : > { %v729_v57 = vmax.f32 %v677_v54, 0.0 }
 0x2ae   : > { %v742_v58 = vpack.c.bf16 %v729_v57, %v728_v56 }
 0x2af   : > { %v681_v59 = vpop.f32.mrb[32].mxu0 }
 0x2b0   : > { %v682_v60 = vadd.f32 %v1919_v49, %v681_v59  ;;  %v1373_v61 = vpop.f32.mrb[33].mxu0  ;;  %1412 = vmatmul.mubr.bf16.vlgmr.msra.gmra.mrb[56].mxu0 %v742_v58 }
 0x2b1   : > { %v684_v62 = vpop.f32.mrb[34].mxu0 }
 0x2b2   : > { %v685_v63 = vadd.f32 %v1919_v49, %v684_v62  ;;  %v1374_v0 = vpop.f32.mrb[35].mxu0  ;;  %v730_v2 = vmax.f32 %v682_v60, 0.0 }
 0x2b4   : > { %v731_v3 = vmax.f32 %v685_v63, 0.0 }
 0x2b6   : > { %v743_v4 = vpack.c.bf16 %v731_v3, %v730_v2 }
 0x2b7   : > { %v689_v5 = vpop.f32.mrb[36].mxu0 }
 0x2b8   : > { %v690_v6 = vadd.f32 %v1919_v49, %v689_v5  ;;  %v1377_v7 = vpop.f32.mrb[37].mxu0  ;;  %1416 = vmatmul.mubr.bf16.vlgmr.msra.gmra.mrb[28].mxu1 %v743_v4 }
 0x2b9   : > { %v692_v8 = vpop.f32.mrb[38].mxu0  ;;  %1419 = vmatprep.mubr.msk.bf16.mxu1 %vm1616_vm0, %v1615_v1 }
 0x2ba   : > { %v693_v9 = vadd.f32 %v1919_v49, %v692_v8  ;;  %v1378_v10 = vpop.f32.mrb[39].mxu0  ;;  %v732_v11 = vmax.f32 %v690_v6, 0.0 }
 0x2bc   : > { %v733_v12 = vmax.f32 %v693_v9, 0.0 }
 0x2be   : > { %v744_v13 = vpack.c.bf16 %v733_v12, %v732_v11 }
 0x2bf   : > { %v697_v14 = vpop.f32.mrb[40].mxu0 }
 0x2c0   : > { %v698_v15 = vadd.f32 %v1919_v49, %v697_v14  ;;  %v1381_v16 = vpop.f32.mrb[41].mxu0  ;;  %1420 = vmatmul.mubr.bf16.gmra.mrb[32].mxu1 %v744_v13 }
 0x2c1   : > { %v700_v17 = vpop.f32.mrb[42].mxu0  ;;  %1423 = vmatprep.mubr.msk.bf16.mxu1 %vm1616_vm0, %v1615_v1 }
 0x2c2   : > { %v701_v18 = vadd.f32 %v1919_v49, %v700_v17  ;;  %v1382_v19 = vpop.f32.mrb[43].mxu0  ;;  %v734_v20 = vmax.f32 %v698_v15, 0.0 }
 0x2c4   : > { %v735_v21 = vmax.f32 %v701_v18, 0.0 }
 0x2c6   : > { %v745_v22 = vpack.c.bf16 %v735_v21, %v734_v20 }
 0x2c7   : > { %v705_v23 = vpop.f32.mrb[44].mxu0 }
 0x2c8   : > { %v706_v24 = vadd.f32 %v1919_v49, %v705_v23  ;;  %v1385_v25 = vpop.f32.mrb[45].mxu0  ;;  %1424 = vmatmul.mubr.bf16.gmra.mrb[36].mxu1 %v745_v22 }
 0x2c9   : > { %v708_v26 = vpop.f32.mrb[46].mxu0  ;;  %1427 = vmatprep.mubr.msk.bf16.mxu1 %vm1616_vm0, %v1615_v1 }
 0x2ca   : > { %v709_v27 = vadd.f32 %v1919_v49, %v708_v26  ;;  %v1386_v28 = vpop.f32.mrb[47].mxu0  ;;  %v736_v29 = vmax.f32 %v706_v24, 0.0 }
 0x2cc   : > { %v737_v30 = vmax.f32 %v709_v27, 0.0 }
 0x2ce   : > { %v746_v31 = vpack.c.bf16 %v737_v30, %v736_v29 }
 0x2cf   : > { %v713_v32 = vpop.f32.mrb[48].mxu0 }
 0x2d0   : > { %v714_v33 = vadd.f32 %v1919_v49, %v713_v32  ;;  %v1389_v34 = vpop.f32.mrb[49].mxu0  ;;  %1428 = vmatmul.mubr.bf16.gmra.mrb[40].mxu1 %v746_v31 }
 0x2d1   : > { %v716_v35 = vpop.f32.mrb[50].mxu0  ;;  %1431 = vmatprep.mubr.msk.bf16.mxu1 %vm1616_vm0, %v1615_v1 }
 0x2d2   : > { %v717_v36 = vadd.f32 %v1919_v49, %v716_v35  ;;  %v1390_v37 = vpop.f32.mrb[51].mxu0  ;;  %v738_v39 = vmax.f32 %v714_v33, 0.0 }
 0x2d4   : > { %v739_v40 = vmax.f32 %v717_v36, 0.0 }
 0x2d6   : > { %v747_v41 = vpack.c.bf16 %v739_v40, %v738_v39 }
 0x2d7   : > { %v721_v38 = vpop.f32.mrb[52].mxu0 }
 0x2d8   : > { %v722_v42 = vadd.f32 %v1919_v49, %v721_v38  ;;  %v1393_v43 = vpop.f32.mrb[53].mxu0  ;;  %1432 = vmatmul.mubr.bf16.gmra.mrb[44].mxu1 %v747_v41 }
 0x2d9   : > { %v724_v44 = vpop.f32.mrb[54].mxu0  ;;  %1435 = vmatprep.mubr.msk.bf16.mxu1 %vm1616_vm0, %v1615_v1 }
 0x2da   : > { %v725_v45 = vadd.f32 %v1919_v49, %v724_v44  ;;  %v1394_v47 = vpop.f32.mrb[55].mxu0  ;;  %v740_v48 = vmax.f32 %v722_v42, 0.0 }
 0x2dc   : > { %v741_v46 = vmax.f32 %v725_v45, 0.0 }
 0x2de   : > { %v748_v50 = vpack.c.bf16 %v741_v46, %v740_v48 }
 0x2e0   : > { %1436 = vmatmul.mubr.bf16.gmra.mrb[48].mxu1 %v748_v50 }
 0x383   : > { %v853_v52 = vpop.f32.mrb[56].mxu0 }
 0x384   : > { %v854_v53 = vadd.f32 %v1949_v51, %v853_v52  ;;  %v1413_v54 = vpop.f32.mrb[57].mxu0 }
 0x385   : > { %v856_v55 = vpop.f32.mrb[58].mxu0 }
 0x386   : > { %v857_v1 = vadd.f32 %v1949_v51, %v856_v55  ;;  %v1414_v49 = vpop.f32.mrb[59].mxu0  ;;  %1523 = vtanh.f32 %v854_v53 }
 0x388   : > { %1525 = vtanh.f32 %v857_v1 }
 0x38b   : > { %v861_v56 = vpop.f32.mrb[28].mxu1 }
 0x38c   : > { %v862_v57 = vadd.f32 %v1949_v51, %v861_v56  ;;  %v1417_v58 = vpop.f32.mrb[29].mxu1 }
 0x38d   : > { %v864_v59 = vpop.f32.mrb[30].mxu1 }
 0x38e   : > { %v865_v60 = vadd.f32 %v1949_v51, %v864_v59  ;;  %v1418_v61 = vpop.f32.mrb[31].mxu1  ;;  %1527 = vtanh.f32 %v862_v57 }
 0x390   : > { %1529 = vtanh.f32 %v865_v60  ;;  %v1524_v62 = vpop.eup %1523 }
 0x392   : > { %v1526_v63 = vpop.eup %1525 }
 0x393   : > { %v1186_v0 = vpack.c.bf16 %v1526_v63, %v1524_v62  ;;  %v869_v2 = vpop.f32.mrb[32].mxu1 }
 0x394   : > { %v870_v3 = vadd.f32 %v1949_v51, %v869_v2  ;;  %v1421_v4 = vpop.f32.mrb[33].mxu1 }
 0x395   : > { %1187 = vst [vmem:[%s1958_s28] sm:$0xff] %v1186_v0   ;;  %v872_v5 = vpop.f32.mrb[34].mxu1 }
 0x396   : > { %v873_v6 = vadd.f32 %v1949_v51, %v872_v5  ;;  %v1422_v7 = vpop.f32.mrb[35].mxu1  ;;  %1531 = vtanh.f32 %v870_v3 }
 0x398   : > { %1533 = vtanh.f32 %v873_v6  ;;  %v1528_v8 = vpop.eup %1527 }
 0x39a   : > { %v1530_v9 = vpop.eup %1529 }
 0x39b   : > { %v1191_v10 = vpack.c.bf16 %v1530_v9, %v1528_v8  ;;  %v877_v11 = vpop.f32.mrb[36].mxu1 }
 0x39c   : > { %v878_v12 = vadd.f32 %v1949_v51, %v877_v11  ;;  %v1425_v13 = vpop.f32.mrb[37].mxu1 }
 0x39d   : > { %1218 = vst [vmem:[%s1958_s28 + $0x8] sm:$0xff] %v1191_v10   ;;  %v880_v14 = vpop.f32.mrb[38].mxu1 }
 0x39e   : > { %v881_v15 = vadd.f32 %v1949_v51, %v880_v14  ;;  %v1426_v16 = vpop.f32.mrb[39].mxu1  ;;  %1535 = vtanh.f32 %v878_v12 }
 0x3a0   : > { %1537 = vtanh.f32 %v881_v15  ;;  %v1532_v17 = vpop.eup %1531 }
 0x3a2   : > { %v1534_v18 = vpop.eup %1533 }
 0x3a3   : > { %v1196_v19 = vpack.c.bf16 %v1534_v18, %v1532_v17  ;;  %v885_v20 = vpop.f32.mrb[40].mxu1 }
 0x3a4   : > { %v886_v21 = vadd.f32 %v1949_v51, %v885_v20  ;;  %v1429_v22 = vpop.f32.mrb[41].mxu1 }
 0x3a5   : > { %1219 = vst [vmem:[%s1958_s28 + $0x10] sm:$0xff] %v1196_v19   ;;  %v888_v23 = vpop.f32.mrb[42].mxu1 }
 0x3a6   : > { %v889_v24 = vadd.f32 %v1949_v51, %v888_v23  ;;  %v1430_v25 = vpop.f32.mrb[43].mxu1  ;;  %1539 = vtanh.f32 %v886_v21 }
 0x3a8   : > { %1541 = vtanh.f32 %v889_v24  ;;  %v1536_v26 = vpop.eup %1535 }
 0x3aa   : > { %v1538_v27 = vpop.eup %1537 }
 0x3ab   : > { %v1201_v28 = vpack.c.bf16 %v1538_v27, %v1536_v26  ;;  %v893_v29 = vpop.f32.mrb[44].mxu1 }
 0x3ac   : > { %v894_v30 = vadd.f32 %v1949_v51, %v893_v29  ;;  %v1433_v31 = vpop.f32.mrb[45].mxu1 }
 0x3ad   : > { %1220 = vst [vmem:[%s1958_s28 + $0x18] sm:$0xff] %v1201_v28   ;;  %v896_v32 = vpop.f32.mrb[46].mxu1 }
 0x3ae   : > { %v897_v33 = vadd.f32 %v1949_v51, %v896_v32  ;;  %v1434_v34 = vpop.f32.mrb[47].mxu1  ;;  %1543 = vtanh.f32 %v894_v30 }
 0x3b0   : > { %1545 = vtanh.f32 %v897_v33  ;;  %v1540_v35 = vpop.eup %1539 }
 0x3b2   : > { %v1542_v36 = vpop.eup %1541 }
 0x3b3   : > { %v1206_v37 = vpack.c.bf16 %v1542_v36, %v1540_v35  ;;  %v901_v39 = vpop.f32.mrb[48].mxu1 }
 0x3b4   : > { %v902_v40 = vadd.f32 %v1949_v51, %v901_v39  ;;  %v1437_v41 = vpop.f32.mrb[49].mxu1 }
 0x3b5   : > { %1221 = vst [vmem:[%s1958_s28 + $0x20] sm:$0xff] %v1206_v37   ;;  %v904_v38 = vpop.f32.mrb[50].mxu1 }
 0x3b6   : > { %v905_v42 = vadd.f32 %v1949_v51, %v904_v38  ;;  %v1438_v43 = vpop.f32.mrb[51].mxu1  ;;  %1547 = vtanh.f32 %v902_v40 }
 0x3b8   : > { %1549 = vtanh.f32 %v905_v42  ;;  %v1544_v44 = vpop.eup %1543 }
 0x3ba   : > { %v1546_v45 = vpop.eup %1545 }
 0x3bb   : > { %v1211_v47 = vpack.c.bf16 %v1546_v45, %v1544_v44 }
 0x3bd   : > { %1222 = vst [vmem:[%s1958_s28 + $0x28] sm:$0xff] %v1211_v47  }
 0x3bf   : > { %999 = sbr.rel (!%p1683_p5) target bundleno = 994 (0x3e2), region = 40 }
 0x3c0   : > { %v1548_v48 = vpop.eup %1547 }
 0x3c2   : > { %v1550_v46 = vpop.eup %1549 }
 0x3c3   : > { %v1216_v50 = vpack.c.bf16 %v1550_v46, %v1548_v48 }
 0x3c5   : > { %1223 = vst [vmem:[%s1958_s28 + $0x30] sm:$0xff] %v1216_v50  }
 0x3c6   : > { %s2051_s5 = smov (!%p1002_p11, %s1001_s5), 14 }
 0x3c7   : > { %s1983_s6 = sshll.u32 %s2051_s5, 6 }
 0x3c8   : > { %s1006_s7 = ssub.s32 896, %s1983_s6 }
 0x3c9   : > { %1007 = vsyncadd %s1978_s30, %s1006_s7  ;;  %p1162_p12 = scmp.ne.s32.totalorder %s1983_s6, 0  ;;  %s1182_s8 = smul.u32 896, %s1666_s19 }
 0x3ca   : > { %s1012_s9 = sshll.u32 %s1958_s28, 4  ;;  %s1617_s12 = smov [#allocation2]   ;;  %s1995_s9 = int_to_ptr.vmem [resolvable:$true] %s1012_s9 }
 0x3cb   : > { %s1993_s11 = scalar_lea.hbm %s2043_s4, %s1182_s8  ;;  %s1551_s29 = scalar_lea.vmem %s1995_s9, %s1983_s6 }
 0x3cc   : > { %p1552_p13 = scmp.ne.s32.totalorder %s1995_s9, %s1551_s29  ;;  %s1555_s13 = sshll.u32 %s1617_s12, 4  ;;  %s1556_s13 = int_to_ptr.vmem [resolvable:$false] %s1555_s13 }
 0x3cd   : > { %s1557_s19 = scalar_lea.vmem %s1556_s13, 1792  ;;  %p1558_p2 = scmp.lt.s32.totalorder %s1995_s9, %s1556_s13 }
 0x3ce   : > { %p1553_p0 = pnand %p1552_p13, %p1162_p12  ;;  %p1559_p3 = scmp.lt.s32.totalorder %s1557_s19, %s1551_s29 }
 0x3d0   : > { %p1554_p1 = pneg %p1553_p0  ;;  %p1560_p4 = por %p1559_p3, %p1558_p2 }
 0x3d2   : > { %p1561_p5 = pnand %p1560_p4, %p1554_p1 }
 0x3d4   : > { %1564 = shalt.err (!%p1561_p5)
}
 0x3d5   : > { %s1565_s14 = scalar_lea.hbm %s1993_s11, %s1983_s6  ;;  %s1569_s23 = scalar_lea.hbm %s2043_s4, 1600 }
 0x3d6   : > { %p1566_p7 = scmp.ne.s32.totalorder %s1993_s11, %s1565_s14  ;;  %p1570_p10 = scmp.lt.u32.totalorder %s1993_s11, %s2043_s4 }
 0x3d7   : > { %p1571_p11 = scmp.lt.u32.totalorder %s1569_s23, %s1565_s14  ;;  %p1573_p0 = scmp.lt.u32.totalorder %s1565_s14, %s1993_s11 }
 0x3d8   : > { %p1567_p8 = pnand %p1566_p7, %p1162_p12 }
 0x3d9   : > { %p1572_p13 = por %p1571_p11, %p1570_p10 }
 0x3da   : > { %p1568_p9 = pneg %p1567_p8 }
 0x3db   : > { %p1574_p1 = por %p1573_p0, %p1572_p13 }
 0x3dd   : > { %p1575_p2 = pnand %p1574_p1, %p1568_p9 }
 0x3df   : > { %1578 = shalt.err (!%p1575_p2)
}
 0x3e0   : > { %s1618_s5 = smov 64   ;;  %s1619_s7 = smov 4  }
 0x3e1   : > { %1018 = dma.vmem_to_hbm [thread:$0]  (%p1162_p12), %s1995_s9, %s1983_s6, %s1993_s11, %s1978_s30, %s1618_s5, %s1618_s5, %s1619_s7  }
 0x3e2 PF: > { %p1461_p3 = scmp.ge.s32.totalorder %s1613_s18, 2  ;;  %s1027_s8 = sand.u32 1, %s1601_s15  }
 0x3e3   : > { %s1028_s25 = scalar_lea.sflag [#allocation3], %s1027_s8 }
 0x3e4   : > { %p1458_p4 = pnand %p1461_p3, %p1687_p6 }
 0x3e6   : > { %1596 = dma.done.wait (!%p1458_p4), %s1028_s25, 896  }
 0x3e7   : > { %1598 = vsyncadd (!%p1458_p4), %s1028_s25, 4294966400  ;;  %p14_p5 = scmp.ge.s32.totalorder %s1670_s21, 4   ;;  %s2046_s15 = smov %s1605_s16 }
 0x3e8   : > { %s2047_s16 = smov %s1609_s17  ;;  %s2048_s17 = smov %s1681_s24 }
 0x3e9   : > { %s2049_s18 = smov %s1670_s21  ;;  %16 = sbr.rel (!%p14_p5) target bundleno = 3 (0x3), region = 73 }
 0x3f0   :  { %1033 = vsyncpa [#allocation3], 1 }
 0x3f1   :  { %1035 = vsyncpa [#allocation3 + $0x1], 1 }

</bundles_post_ra>
